<compile_context>
chip_gen: v7x
topology: tpu7x:2x2x1
jax: 0.10.0
libtpu: 0.0.40
codegen_flags: <defaults>
</compile_context>

<pallas_src>
import jax
import jax.numpy as jnp
from jax.experimental import pallas as pl
from jax.experimental.pallas import tpu as pltpu


INV_T = 2.0          # 1 / T,  T = 0.5 in the module
EPS = 1e-12          # F.normalize eps


def _gnet_binary_kernel(x_ref, pn_ref, o_ref):
    x = x_ref[...]                      # [bm, D]  f32 (raw, un-normalized)
    pn = pn_ref[...]                    # [N,  D]  f32 (pre-normalized * 1/T)
    D = x.shape[1]

    # Raw logits with the batch on the lane axis: [N, bm].
    logits = jax.lax.dot_general(
        pn, x, (((1,), (1,)), ((), ())),
        preferred_element_type=jnp.float32)

    # Per-example sum of squares computed on the MXU against a ones row so the
    # result is directly lane-major [1, bm] (no transpose of a [bm, 1]).
    ones_row = jnp.ones((1, D), jnp.float32)
    x_ss = jax.lax.dot_general(
        ones_row, x * x, (((1,), (1,)), ((), ())),
        preferred_element_type=jnp.float32)             # [1, bm]

    # F.normalize: x / max(||x||, eps)  ==  x * rsqrt(max(sum_sq, eps^2)).
    inv_n = jax.lax.rsqrt(jnp.maximum(x_ss, EPS * EPS))  # [1, bm]
    logits = logits * inv_n                              # scale tiny logits only

    # Numerically stable softmax over the prototype axis (axis 0 / sublanes),
    # keep only class 0 -> lane-dense [1, bm] output block.
    m = jnp.max(logits, axis=0, keepdims=True)           # [1, bm]
    e = jnp.exp(logits - m)                               # [N, bm]
    denom = jnp.sum(e, axis=0, keepdims=True)             # [1, bm]
    o_ref[...] = e[0:1, :] / denom                        # [1, bm]


def _pick_block_b(B: int, D: int) -> int:
    """VMEM-budget-aware batch tile.

    Roughly 4 f32 copies of the x tile live at once (double-buffered input +
    in-kernel temporaries); keep them under ~16 MiB so the kernel fits the
    default scoped VMEM on every chip (v7x only has 64 MiB physical).  The
    output's last (lane) dim is the batch, so tiles must be multiples of 128
    or the whole batch.
    """
    budget = 16 * 1024 * 1024

    def fits(bm):
        return 16 * bm * D <= budget

    for c in (4096, 2048, 1024, 512, 256, 128):
        if c > B or not fits(c):
            continue
        # For large batches keep >= 2 grid steps so both v7x TensorCores get
        # work and the BlockSpec pipeline has something to overlap.
        if B > 256 and pl.cdiv(B, c) < 2:
            continue
        return c
    # Small (or pathologically wide-D) batch: one whole-array block, which is
    # always layout-legal (full-dim blocks bypass the (8, 128) rule).
    # TODO(synk): a D-axis split would be needed for absurdly large D.
    return B if B < 128 else 128


@jax.jit
def gnet_binary_forward(x, prototype):
    """x: [B, dim] f32, prototype: [N, dim] f32 -> [B] f32 (P(class 0))."""
    B, D = x.shape
    N, D2 = prototype.shape
    assert D == D2, (D, D2)
    x = x.astype(jnp.float32)
    prototype = prototype.astype(jnp.float32)

    # Prototype is tiny (N x D): normalize once outside the grid loop and fold
    # 1/T in, so the kernel never re-does this work per grid step.
    p_ss = jnp.sum(prototype * prototype, axis=1, keepdims=True)
    pn = prototype * jax.lax.rsqrt(jnp.maximum(p_ss, EPS * EPS)) * INV_T

    block_b = _pick_block_b(B, D)
    grid = (pl.cdiv(B, block_b),)

    out = pl.pallas_call(
        _gnet_binary_kernel,
        out_shape=jax.ShapeDtypeStruct((1, B), jnp.float32),
        grid=grid,
        in_specs=[
            pl.BlockSpec((block_b, D), lambda i: (i, 0)),   # batch tile of x
            pl.BlockSpec((N, D), lambda i: (0, 0)),         # pn, VMEM-resident
        ],
        out_specs=pl.BlockSpec((1, block_b), lambda i: (0, i)),  # lane-dense
        compiler_params=pltpu.CompilerParams(
            dimension_semantics=("parallel",),
            vmem_limit_bytes=32 * 1024 * 1024),
    )(x, pn)
    return out[0]


# ----------------------------------------------------------------------------
# Pure-JAX reference (mirrors the PyTorch forward) for correctness checking.
# ----------------------------------------------------------------------------
def _ref_forward(x, prototype, T=0.5, eps=1e-12):
    xn = x / jnp.maximum(jnp.linalg.norm(x, axis=1, keepdims=True), eps)
    pn = prototype / jnp.maximum(
        jnp.linalg.norm(prototype, axis=1, keepdims=True), eps)
    logits = xn @ pn.T / T
    return jax.nn.softmax(logits, axis=1)[:, 0]


if __name__ == "__main__":
    key = jax.random.PRNGKey(0)
    k1, k2, k3, k4, k5, k6 = jax.random.split(key, 6)

    # Small shapes consistent with the module: batch=8, dim=32, N=4 prototypes.
    B, N, D = 8, 4, 32
    x = jax.random.normal(k1, (B, D), jnp.float32)
    prototype = jax.random.normal(k2, (N, D), jnp.float32)  # torch.randn(N, dim)
    out = gnet_binary_forward(x, prototype)
    jax.block_until_ready(out)
    ref = _ref_forward(x, prototype)
    assert out.shape == (B,), out.shape
    assert bool(jnp.all(jnp.isfinite(out)))
    assert bool(jnp.allclose(out, ref, atol=2e-5, rtol=2e-5))

    # Multi-tile case: >= 2 grid steps (megacore / pipelined), lane-dense out.
    B2, N2, D2 = 512, 4, 64
    x2 = jax.random.normal(k3, (B2, D2), jnp.float32)
    p2 = jax.random.normal(k4, (N2, D2), jnp.float32)
    out2 = gnet_binary_forward(x2, p2)
    jax.block_until_ready(out2)
    assert out2.shape == (B2,)
    assert bool(jnp.allclose(out2, _ref_forward(x2, p2), atol=2e-5, rtol=2e-5))

    # Non-multiple batch: exercises the clipped partial last block.
    B3, N3, D3 = 200, 6, 48
    x3 = jax.random.normal(k5, (B3, D3), jnp.float32)
    p3 = jax.random.normal(k6, (N3, D3), jnp.float32)
    out3 = gnet_binary_forward(x3, p3)
    jax.block_until_ready(out3)
    assert out3.shape == (B3,)
    assert bool(jnp.allclose(out3, _ref_forward(x3, p3), atol=2e-5, rtol=2e-5))

    print("KERNEL_OK")
</pallas_src>

<mosaic_0001>
module attributes {stable_mosaic.version = 11 : i64} {
  func.func @_gnet_binary_kernel(%arg0: i32, %arg1: memref<8x32xf32, #tpu.memory_space<vmem>>, %arg2: memref<4x32xf32, #tpu.memory_space<vmem>>, %arg3: memref<1x8xf32, #tpu.memory_space<vmem>>) attributes {dimension_semantics = [#tpu.dimension_semantics<parallel>], iteration_bounds = array<i64: 1>, scalar_prefetch = 0 : i64, scratch_operands = 0 : i64, tpu.core_type = #tpu.core_type<tc>, window_params = [{transform_indices = @transform_0, window_bounds = array<i64: 8, 32>}, {pipeline_mode = #tpu.pipeline_mode<synchronous>, transform_indices = @transform_1, window_bounds = array<i64: 4, 32>}, {transform_indices = @transform_2, window_bounds = array<i64: 1, 8>}]} {
    %c0 = arith.constant 0 : index
    %c0_0 = arith.constant 0 : index
    %0 = vector.load %arg1[%c0, %c0_0] : memref<8x32xf32, #tpu.memory_space<vmem>>, vector<8x32xf32>
    %c0_1 = arith.constant 0 : index
    %c0_2 = arith.constant 0 : index
    %1 = vector.load %arg2[%c0_1, %c0_2] : memref<4x32xf32, #tpu.memory_space<vmem>>, vector<4x32xf32>
    %cst = arith.constant dense<0.000000e+00> : vector<4x8xf32>
    %2 = tpu.matmul %1, %0, %cst {dimension_numbers = #tpu.dot_dimension_numbers<[1], [1], [0], [0], [0, 0, 1, 0], [], []>} : vector<4x32xf32>, vector<8x32xf32>, vector<4x8xf32> -> vector<4x8xf32>
    %cst_3 = arith.constant 1.000000e+00 : f32
    %3 = vector.broadcast %cst_3 : f32 to vector<1x32xf32>
    %4 = arith.mulf %0, %0 : vector<8x32xf32>
    %cst_4 = arith.constant dense<0.000000e+00> : vector<1x8xf32>
    %5 = tpu.matmul %3, %4, %cst_4 {dimension_numbers = #tpu.dot_dimension_numbers<[1], [1], [0], [0], [0, 0, 1, 0], [], []>} : vector<1x32xf32>, vector<8x32xf32>, vector<1x8xf32> -> vector<1x8xf32>
    %cst_5 = arith.constant 1.000000e-24 : f32
    %6 = vector.broadcast %cst_5 : f32 to vector<1x8xf32>
    %7 = arith.maximumf %5, %6 : vector<1x8xf32>
    %8 = math.rsqrt %7 : vector<1x8xf32>
    %9 = vector.broadcast %8 : vector<1x8xf32> to vector<4x8xf32>
    %10 = arith.mulf %2, %9 : vector<4x8xf32>
    %cst_6 = arith.constant dense<0xFF800000> : vector<8xf32>
    %11 = vector.multi_reduction <maximumf>, %10, %cst_6 [0] : vector<4x8xf32> to vector<8xf32>
    %12 = vector.shape_cast %11 : vector<8xf32> to vector<1x8xf32>
    %13 = vector.broadcast %12 : vector<1x8xf32> to vector<4x8xf32>
    %14 = arith.subf %10, %13 : vector<4x8xf32>
    %15 = math.exp %14 : vector<4x8xf32>
    %cst_7 = arith.constant dense<0.000000e+00> : vector<8xf32>
    %16 = vector.multi_reduction <add>, %15, %cst_7 [0] : vector<4x8xf32> to vector<8xf32>
    %17 = vector.shape_cast %16 : vector<8xf32> to vector<1x8xf32>
    %18 = vector.extract_strided_slice %15 {offsets = [0, 0], sizes = [1, 8], strides = [1, 1]} : vector<4x8xf32> to vector<1x8xf32>
    %19 = arith.divf %18, %17 : vector<1x8xf32>
    %c0_8 = arith.constant 0 : index
    %c0_9 = arith.constant 0 : index
    %20 = vector.load %arg3[%c0_8, %c0_9] : memref<1x8xf32, #tpu.memory_space<vmem>>, vector<1x8xf32>
    tpu.vector_store %arg3[%c0_8, %c0_9], %19 {strides = array<i32>} : memref<1x8xf32, #tpu.memory_space<vmem>>, vector<1x8xf32>,
    return
  }
  func.func @transform_0(%arg0: i32) -> (i32, i32) {
    %c0_i32 = arith.constant 0 : i32
    %c0_i32_0 = arith.constant 0 : i32
    return %arg0, %c0_i32 : i32, i32
  }
  func.func @transform_1(%arg0: i32) -> (i32, i32) {
    %c0_i32 = arith.constant 0 : i32
    %c0_i32_0 = arith.constant 0 : i32
    %c0_i32_1 = arith.constant 0 : i32
    return %c0_i32, %c0_i32_0 : i32, i32
  }
  func.func @transform_2(%arg0: i32) -> (i32, i32) {
    %c0_i32 = arith.constant 0 : i32
    %c0_i32_0 = arith.constant 0 : i32
    return %c0_i32, %arg0 : i32, i32
  }
}

</mosaic_0001>

<bundles_post_ra>
// kernel: gnet_binary_forward.1
= control target key start
LH: loop header
LB: loop body
LE: loop exit
PB: predicated region body
PF: predicated region fallthrough
CT: control target
= control target key end

     0   :  { %vm14_vm0 = vcmask 261120   ;;  %v263_v1 = vmov 0.0   ;;  %vm264_vm1 = vmmov 0   ;;  %s300_s0 = inlined_call_operand.vmem [shape: f32[8,32], index: 0, kind: input, shape index: {}]   ;;  %s301_s1 = inlined_call_operand.vmem [shape: f32[4,32], index: 1, kind: input, shape index: {}]   ;;  %s302_s2 = inlined_call_operand.hbm [shape: f32[1,8], index: 2, kind: output, shape index: {}]  }
   0x1   :  { %v12_v0 = vld [vmem:[%s300_s0] sm:$0xff]  ;;  %224 = vmatprep.subr.mxu1 %v263_v1  ;;  %226 = vmatprep.mubr.msk.f32.mxu1 %vm264_vm1, %v263_v1 }
   0x2   :  { %v91_v2 = vmul.f32 %v12_v0, %v12_v0 }
   0x3   :  { %7 = vsyncpa [#allocation3], 0  ;;  %219 = vmatprep.subr.mxu0 %v263_v1  ;;  %221 = vmatprep.mubr.msk.f32.mxu0 %vm264_vm1, %v263_v1  ;;  %v13_v3 = vld [vmem:[%s301_s1] sm:$0xf]  ;;  %v265_v4 = vmov 1.0   ;;  %v170_v10 = vlaneseq  ;;  %vm175_vm2 = vcmask 60416  }
   0x4   :  { %225 = vmatpush3.xpose.msk.msra.mxu1 %vm14_vm0, %v91_v2  ;;  %220 = vmatpush3.xpose.msk.msra.mxu0 %vm14_vm0, %v12_v0  ;;  %s266_s0 = smov [#allocation2]   ;;  %vm195_vm3 = vcmask 57344  }
   0x5   :  { %v171_v11 = vshrl.u32 %v170_v10, 7  ;;  %s203_s1 = sshll.u32 %s266_s0, 4  ;;  %s204_s1 = int_to_ptr.vmem [resolvable:$true] %s203_s1 }
   0x6   :  { %s239_s13 = scalar_lea.vmem %s204_s1, 16  ;;  %s243_s14 = scalar_lea.vmem %s204_s1, 32 }
   0x7   :  { %227 = vmatmul.mubr.msk.f32.vlgmr.msra.gmra.mrb[0].mxu1 %vm14_vm0, %v265_v4  ;;  %222 = vmatmul.mubr.msk.f32.vlgmr.msra.gmra.mrb[0].mxu0 %vm14_vm0, %v13_v3  ;;  %v172_v12 = vsub.s32 0, %v171_v11  ;;  %p240_p0 = scmp.ne.s32.totalorder %s204_s1, %s239_s13  ;;  %p244_p1 = scmp.lt.s32.totalorder %s204_s1, %s204_s1 }
   0x8   :  { %p245_p2 = scmp.lt.s32.totalorder %s243_s14, %s239_s13 }
   0xa   :  { %p246_p3 = por %p245_p2, %p244_p1 }
   0xc   :  { %p247_p4 = pnand %p246_p3, %p240_p0 }
  0xda   :  { %v164_v5 = vpop.f32.mrb[0].mxu1  ;;  %v87_v6 = vpop.f32.mrb[0].mxu0 }
  0xdb   :  { %v168_v7 = vmax.f32 %v164_v5, 1e-24  ;;  %v228_v8 = vpop.f32.mrb[1].mxu1  ;;  %v223_v9 = vpop.f32.mrb[1].mxu0 }
  0xdd   :  { %233 = vrsqrt.f32 %v168_v7 }
  0xe7   :  { %v234_v13 = vpop.eup %233 }
  0xe8   :  { %v173_v14 = vrot.slane %v234_v13, %v172_v12 }
  0xea   :  { %v174_v15 = vmul.f32 %v173_v14, %v87_v6 }
  0xec   :  { %v176_v16 = vsel %vm175_vm2, %v174_v15, -inf }
  0xed   :  { %v177_v17 = vrot.slane %v176_v16, 4 }
  0xef   :  { %v178_v18 = vmax.f32 %v176_v16, %v177_v17 }
  0xf1   :  { %v179_v19 = vrot.slane %v178_v18, 2 }
  0xf3   :  { %v180_v20 = vmax.f32 %v178_v18, %v179_v19 }
  0xf5   :  { %v181_v21 = vrot.slane %v180_v20, 1 }
  0xf7   :  { %v182_v22 = vmax.f32 %v180_v20, %v181_v21 }
  0xf9   :  { %v183_v23 = vsub.f32 %v174_v15, %v182_v22 }
  0xfb   :  { %v184_v24 = vmul.f32 1.442695, %v183_v23 }
  0xfd   :  { %235 = vpow2.f32 %v184_v24 }
 0x107   :  { %v236_v25 = vpop.eup %235 }
 0x108   :  { %v186_v26 = vsel %vm175_vm2, %v236_v25, 0.0 }
 0x109   :  { %v187_v27 = vrot.slane %v186_v26, 4 }
 0x10b   :  { %v188_v28 = vadd.f32 %v187_v27, %v186_v26 }
 0x10d   :  { %v189_v29 = vrot.slane %v188_v28, 2 }
 0x10f   :  { %v190_v30 = vadd.f32 %v189_v29, %v188_v28 }
 0x111   :  { %v191_v31 = vrot.slane %v190_v30, 1 }
 0x113   :  { %v192_v32 = vadd.f32 %v191_v31, %v190_v30 }
 0x115   :  { %237 = vrcp.f32 %v192_v32 }
 0x11f   :  { %v238_v33 = vpop.eup %237 }
 0x120   :  { %v194_v34 = vmul.f32 %v238_v33, %v236_v25 }
 0x122   :  { %196 = vst.msk [vmem:[#allocation2] sm:$0x1] %vm195_vm3, %v194_v34 }
 0x123   :  { %250 = shalt.err (!%p247_p4)
}
 0x124   :  { %s251_s17 = scalar_lea.hbm %s302_s2, 16 }
 0x125   :  { %p252_p5 = scmp.ne.s32.totalorder %s302_s2, %s251_s17  ;;  %p255_p6 = scmp.lt.u32.totalorder %s251_s17, %s302_s2 }
 0x127   :  { %p257_p7 = pnand %p255_p6, %p252_p5 }
 0x129   :  { %260 = shalt.err (!%p257_p7)
}
 0x12a   :  { %206 = dma.vmem_to_hbm [thread:$0]  %s204_s1, 16, %s302_s2, [#allocation3]  }
 0x12b   :  { %261 = dma.done.wait [#allocation3], 16  }
 0x12c   :  { %262 = vsyncadd [#allocation3], 4294967280 }
 0x12d   :  { %210 = vsyncpa [#allocation3], 1 }

</bundles_post_ra>
